<compile_context>
chip_gen: v7x
topology: tpu7x:2x2x1
jax: 0.10.0
libtpu: 0.0.40
codegen_flags: <defaults>
</compile_context>

<pallas_src>
import functools

import jax
import jax.numpy as jnp
from jax.experimental import pallas as pl
from jax.experimental.pallas import tpu as pltpu

_LANE = 128
_HEAD_HIDDEN = 128  # FeedForwardNetwork(..., architecture=[128]) hidden width


def _round_up(x, m):
    return (x + m - 1) // m * m


def _out_pad(state_dim):
    return _round_up(max(state_dim + 2, _LANE), _LANE)


# ----------------------------------------------------------------------------- kernel
def _world_model_kernel(
    act_ref, st_ref,                     # (tb, A), (tb, S)
    aw0, ab0, sw0, sb0,                  # head first layers
    fa_w, fs_w, fb1,                     # (head 2nd layer) @ (hidden 1st layer), folded
    mw1, mb1,                            # hidden model middle layer
    fp_w, fp_b,                          # (hidden last layer) @ (pred-head 1st layers), folded
    pw1, pb1,                            # pred-head 2nd layers, block-diag -> output slab
    out_ref,                             # (tb, OUT_PAD) [next_state | reward | done | 0]
    *, done_col,
):
    def mm(x, w_ref):
        w = w_ref[...]
        # Cast activation to weight dtype (no-op for f32, bf16 MXU path for
        # bf16 weights); always accumulate in f32.
        return jnp.dot(x.astype(w.dtype), w, preferred_element_type=jnp.float32)

    def relu(v):
        return jnp.maximum(v, 0.0)

    # Head first layers, applied directly to the un-padded inputs (no concat,
    # no zero-padded columns).
    a1 = relu(mm(act_ref[...], aw0) + ab0[...])          # (tb, 128)
    s1 = relu(mm(st_ref[...], sw0) + sb0[...])           # (tb, 128)

    # Folded (head 2nd layer) @ (hidden-model 1st layer): exact, no activation
    # existed between them in the reference model.
    h = relu(mm(a1, fa_w) + mm(s1, fs_w) + fb1[...])     # (tb, 128)
    h = relu(mm(h, mw1) + mb1[...])                      # (tb, 128)

    # Folded (hidden-model last layer) @ (prediction-head 1st layers).
    hh = relu(mm(h, fp_w) + fp_b[...])                   # (tb, 384)

    # Prediction-head 2nd layers fused block-diagonally into one lane-dense
    # output slab: cols [0:S]=next_state, [S]=reward, [S+1]=done.
    slab = mm(hh, pw1) + pb1[...]                        # (tb, OUT_PAD)

    # Sigmoid on the done column only (full-slab sigmoid kept: EUP slot is
    # otherwise idle and this lowering is verified on TPU).
    col = jax.lax.broadcasted_iota(jnp.int32, slab.shape, 1)
    out_ref[...] = jnp.where(col == done_col, jax.nn.sigmoid(slab), slab)


# ----------------------------------------------------------------------------- params
def _init_linear(key, fan_in, fan_out):
    """PyTorch-style nn.Linear init; weight already transposed to (in, out)."""
    kw, kb = jax.random.split(key)
    bound = 1.0 / jnp.sqrt(jnp.float32(fan_in))
    w = jax.random.uniform(kw, (fan_in, fan_out), jnp.float32, -bound, bound)
    b = jax.random.uniform(kb, (1, fan_out), jnp.float32, -bound, bound)
    return w, b


def init_world_model_params(key, state_dim, action_dim, latent_dim=128,
                            architecture=(128, 128)):
    """Per-layer params mirroring the PyTorch module layout."""
    keys = iter(jax.random.split(key, 13))
    p = {}
    # state head: Linear(S,128) -> ReLU -> Linear(128, L)
    p["sh_w0"], p["sh_b0"] = _init_linear(next(keys), state_dim, _HEAD_HIDDEN)
    p["sh_w1"], p["sh_b1"] = _init_linear(next(keys), _HEAD_HIDDEN, latent_dim)
    # action head: Linear(A,128) -> ReLU -> Linear(128, L)
    p["ah_w0"], p["ah_b0"] = _init_linear(next(keys), action_dim, _HEAD_HIDDEN)
    p["ah_w1"], p["ah_b1"] = _init_linear(next(keys), _HEAD_HIDDEN, latent_dim)
    # hidden model: Linear(2L,128) -> ReLU -> Linear(128,128) -> ReLU -> Linear(128,L)
    p["hm_w0"], p["hm_b0"] = _init_linear(next(keys), 2 * latent_dim, architecture[0])
    p["hm_w1"], p["hm_b1"] = _init_linear(next(keys), architecture[0], architecture[1])
    p["hm_w2"], p["hm_b2"] = _init_linear(next(keys), architecture[1], latent_dim)
    # prediction heads
    p["ns_w0"], p["ns_b0"] = _init_linear(next(keys), latent_dim, _HEAD_HIDDEN)
    p["ns_w1"], p["ns_b1"] = _init_linear(next(keys), _HEAD_HIDDEN, state_dim)
    p["rw_w0"], p["rw_b0"] = _init_linear(next(keys), latent_dim, _HEAD_HIDDEN)
    p["rw_w1"], p["rw_b1"] = _init_linear(next(keys), _HEAD_HIDDEN, 1)
    p["dn_w0"], p["dn_b0"] = _init_linear(next(keys), latent_dim, _HEAD_HIDDEN)
    p["dn_w1"], p["dn_b1"] = _init_linear(next(keys), _HEAD_HIDDEN, 1)
    return p


_WEIGHT_KEYS = ("aw0", "sw0", "fa_w", "fs_w", "mw1", "fp_w", "pw1")

_PACKED_ORDER = ["aw0", "ab0", "sw0", "sb0",
                 "fa_w", "fs_w", "fb1",
                 "mw1", "mb1",
                 "fp_w", "fp_b",
                 "pw1", "pb1"]


def pack_world_model_params(p, state_dim, action_dim, latent_dim=128,
                            compute_dtype=jnp.float32):
    """Pack per-layer params into the fused/folded kernel layout.

    Done once (outside the hot path).  compute_dtype=jnp.bfloat16 is the
    recommended setting on all generations (v5e/v6e/v7x: bf16-native MXU,
    half the weight DMA bytes); biases stay f32 for the VPU-side add.  All
    algebraic folds are computed in f32 and cast once at the end.
    """
    S, A, L, H = state_dim, action_dim, latent_dim, _HEAD_HIDDEN
    out_pad = _out_pad(S)
    f32 = jnp.float32

    # Fold 1: (head second layers) @ (hidden-model first layer).
    # Exact: the reference has no activation after ah_w1 / sh_w1.
    fa_w = p["ah_w1"].astype(f32) @ p["hm_w0"][:L].astype(f32)            # (H, 128)
    fs_w = p["sh_w1"].astype(f32) @ p["hm_w0"][L:].astype(f32)            # (H, 128)
    fb1 = (p["ah_b1"].astype(f32) @ p["hm_w0"][:L].astype(f32)
           + p["sh_b1"].astype(f32) @ p["hm_w0"][L:].astype(f32)
           + p["hm_b0"].astype(f32))                                      # (1, 128)

    # Fold 2: (hidden-model last layer) @ (fused prediction-head first layers).
    # Exact: no activation after hm_w2 in the reference.
    pw0 = jnp.concatenate([p["ns_w0"], p["rw_w0"], p["dn_w0"]], axis=-1)  # (L, 3H)
    pb0 = jnp.concatenate([p["ns_b0"], p["rw_b0"], p["dn_b0"]], axis=-1)  # (1, 3H)
    fp_w = p["hm_w2"].astype(f32) @ pw0.astype(f32)                       # (128, 3H)
    fp_b = p["hm_b2"].astype(f32) @ pw0.astype(f32) + pb0.astype(f32)     # (1, 3H)

    # Prediction heads, second layers fused block-diagonally into one
    # lane-dense slab: columns [0:S]=next_state, [S]=reward, [S+1]=done.
    pw1 = jnp.zeros((3 * H, out_pad), f32)
    pw1 = pw1.at[:H, :S].set(p["ns_w1"])
    pw1 = pw1.at[H:2 * H, S:S + 1].set(p["rw_w1"])
    pw1 = pw1.at[2 * H:, S + 1:S + 2].set(p["dn_w1"])
    pb1 = jnp.zeros((1, out_pad), f32)
    pb1 = pb1.at[:, :S].set(p["ns_b1"])
    pb1 = pb1.at[:, S:S + 1].set(p["rw_b1"])
    pb1 = pb1.at[:, S + 1:S + 2].set(p["dn_b1"])

    packed = dict(aw0=p["ah_w0"], ab0=p["ah_b0"],
                  sw0=p["sh_w0"], sb0=p["sh_b0"],
                  fa_w=fa_w, fs_w=fs_w, fb1=fb1,
                  mw1=p["hm_w1"], mb1=p["hm_b1"],
                  fp_w=fp_w, fp_b=fp_b,
                  pw1=pw1, pb1=pb1)
    return {k: (v.astype(compute_dtype) if k in _WEIGHT_KEYS
                else v.astype(f32))
            for k, v in packed.items()}


# ----------------------------------------------------------------------------- wrapper
def world_model_forward(packed, state, action, *, state_dim, action_dim):
    batch = state.shape[0]
    out_pad = _out_pad(state_dim)
    w_dtype = packed["pw1"].dtype

    # Batch tiling: up to 512 rows per grid step; when batch >= 16 split into
    # >= 2 parallel steps so both v7x TensorCores are used (megacore).  Tiles
    # are 16-row aligned so bf16 inputs get clean sublane packing.
    if batch >= 16:
        tb = min(512, _round_up(pl.cdiv(batch, 2), 16))
    else:
        tb = _round_up(max(batch, 1), 16)
    n_blk = pl.cdiv(batch, tb)
    batch_p = n_blk * tb

    # Inputs are passed un-concatenated / un-padded in the lane dim (full-last-
    # dim blocks); only the batch dim is padded when needed.  Cast to the
    # weight dtype (bf16 path halves input HBM bytes; f32 path is a no-op).
    st = state.astype(w_dtype)
    ac = action.astype(w_dtype)
    if batch_p != batch:
        st = jnp.pad(st, ((0, batch_p - batch), (0, 0)))
        ac = jnp.pad(ac, ((0, batch_p - batch), (0, 0)))

    flat = [packed[k] for k in _PACKED_ORDER]
    # Weights stay resident across grid steps (constant index_map).
    weight_specs = [pl.BlockSpec(w.shape, lambda i: (0, 0)) for w in flat]

    kernel = functools.partial(_world_model_kernel, done_col=state_dim + 1)
    slab = pl.pallas_call(
        kernel,
        out_shape=jax.ShapeDtypeStruct((batch_p, out_pad), jnp.float32),
        grid=(n_blk,),
        in_specs=[pl.BlockSpec((tb, action_dim), lambda i: (i, 0)),
                  pl.BlockSpec((tb, state_dim), lambda i: (i, 0))] + weight_specs,
        out_specs=pl.BlockSpec((tb, out_pad), lambda i: (i, 0)),
        compiler_params=pltpu.CompilerParams(dimension_semantics=("parallel",)),
    )(ac, st, *flat)

    slab = slab[:batch]
    next_state = slab[:, :state_dim]
    reward = slab[:, state_dim:state_dim + 1]
    done = slab[:, state_dim + 1:state_dim + 2]
    return next_state, reward, done


# ----------------------------------------------------------------------------- reference
def _reference_forward(params, state, action):
    """Pure-JAX (f32) reference mirroring the PyTorch module."""
    def lin(x, w, b):
        return x @ w + b

    relu = lambda v: jnp.maximum(v, 0.0)
    a_h = lin(relu(lin(action, params["ah_w0"], params["ah_b0"])),
              params["ah_w1"], params["ah_b1"])
    s_h = lin(relu(lin(state, params["sh_w0"], params["sh_b0"])),
              params["sh_w1"], params["sh_b1"])
    hidden = jnp.concatenate([a_h, s_h], axis=-1)
    h = relu(lin(hidden, params["hm_w0"], params["hm_b0"]))
    h = relu(lin(h, params["hm_w1"], params["hm_b1"]))
    h = lin(h, params["hm_w2"], params["hm_b2"])
    next_state = lin(relu(lin(h, params["ns_w0"], params["ns_b0"])),
                     params["ns_w1"], params["ns_b1"])
    reward = lin(relu(lin(h, params["rw_w0"], params["rw_b0"])),
                 params["rw_w1"], params["rw_b1"])
    done = jax.nn.sigmoid(lin(relu(lin(h, params["dn_w0"], params["dn_b0"])),
                              params["dn_w1"], params["dn_b1"]))
    return next_state, reward, done


if __name__ == "__main__":
    STATE_DIM, ACTION_DIM, LATENT_DIM, BATCH = 16, 4, 128, 8

    key = jax.random.PRNGKey(0)
    k_params, k_state, k_action, k_state2, k_action2 = jax.random.split(key, 5)

    params = init_world_model_params(k_params, STATE_DIM, ACTION_DIM, LATENT_DIM)
    state = jax.random.normal(k_state, (BATCH, STATE_DIM), jnp.float32)
    action = jax.random.normal(k_action, (BATCH, ACTION_DIM), jnp.float32)

    # ---- f32 path (bit-faithful to the PyTorch module, modulo fold re-assoc).
    packed_f32 = pack_world_model_params(params, STATE_DIM, ACTION_DIM, LATENT_DIM)
    next_state, reward, done = world_model_forward(
        packed_f32, state, action, state_dim=STATE_DIM, action_dim=ACTION_DIM)
    jax.block_until_ready((next_state, reward, done))

    ref_ns, ref_rw, ref_dn = _reference_forward(params, state, action)
    assert next_state.shape == (BATCH, STATE_DIM)
    assert reward.shape == (BATCH, 1) and done.shape == (BATCH, 1)
    assert jnp.allclose(next_state, ref_ns, atol=1e-4, rtol=1e-4)
    assert jnp.allclose(reward, ref_rw, atol=1e-4, rtol=1e-4)
    assert jnp.allclose(done, ref_dn, atol=1e-4, rtol=1e-4)

    # ---- multi-block path (grid > 1, batch padding) value check.
    BATCH2 = 40
    state2 = jax.random.normal(k_state2, (BATCH2, STATE_DIM), jnp.float32)
    action2 = jax.random.normal(k_action2, (BATCH2, ACTION_DIM), jnp.float32)
    ns2, rw2, dn2 = world_model_forward(
        packed_f32, state2, action2, state_dim=STATE_DIM, action_dim=ACTION_DIM)
    jax.block_until_ready((ns2, rw2, dn2))
    r_ns2, r_rw2, r_dn2 = _reference_forward(params, state2, action2)
    assert ns2.shape == (BATCH2, STATE_DIM)
    assert jnp.allclose(ns2, r_ns2, atol=1e-4, rtol=1e-4)
    assert jnp.allclose(rw2, r_rw2, atol=1e-4, rtol=1e-4)
    assert jnp.allclose(dn2, r_dn2, atol=1e-4, rtol=1e-4)

    # ---- bf16-weight path (recommended on v5e/v6e/v7x): same kernel, bf16
    # weights + bf16 input cast, f32 accumulation preserved.  Value-checked
    # against the f32 reference with a bf16-appropriate tolerance.
    packed_bf16 = pack_world_model_params(params, STATE_DIM, ACTION_DIM,
                                          LATENT_DIM, compute_dtype=jnp.bfloat16)
    ns16, rw16, dn16 = world_model_forward(
        packed_bf16, state, action, state_dim=STATE_DIM, action_dim=ACTION_DIM)
    jax.block_until_ready((ns16, rw16, dn16))
    assert ns16.shape == (BATCH, STATE_DIM)
    assert jnp.allclose(ns16, ref_ns, atol=5e-2, rtol=5e-2)
    assert jnp.allclose(rw16, ref_rw, atol=5e-2, rtol=5e-2)
    assert jnp.allclose(dn16, ref_dn, atol=5e-2, rtol=5e-2)

    print("KERNEL_OK")
</pallas_src>

<mosaic_0001>
module attributes {stable_mosaic.version = 11 : i64} {
  func.func @_world_model_kernel(%arg0: i32, %arg1: memref<16x4xf32, #tpu.memory_space<vmem>>, %arg2: memref<16x16xf32, #tpu.memory_space<vmem>>, %arg3: memref<4x128xf32, #tpu.memory_space<vmem>>, %arg4: memref<1x128xf32, #tpu.memory_space<vmem>>, %arg5: memref<16x128xf32, #tpu.memory_space<vmem>>, %arg6: memref<1x128xf32, #tpu.memory_space<vmem>>, %arg7: memref<128x128xf32, #tpu.memory_space<vmem>>, %arg8: memref<128x128xf32, #tpu.memory_space<vmem>>, %arg9: memref<1x128xf32, #tpu.memory_space<vmem>>, %arg10: memref<128x128xf32, #tpu.memory_space<vmem>>, %arg11: memref<1x128xf32, #tpu.memory_space<vmem>>, %arg12: memref<128x384xf32, #tpu.memory_space<vmem>>, %arg13: memref<1x384xf32, #tpu.memory_space<vmem>>, %arg14: memref<384x128xf32, #tpu.memory_space<vmem>>, %arg15: memref<1x128xf32, #tpu.memory_space<vmem>>, %arg16: memref<16x128xf32, #tpu.memory_space<vmem>>) attributes {dimension_semantics = [#tpu.dimension_semantics<parallel>], iteration_bounds = array<i64: 1>, scalar_prefetch = 0 : i64, scratch_operands = 0 : i64, tpu.core_type = #tpu.core_type<tc>, window_params = [{transform_indices = @transform_0, window_bounds = array<i64: 16, 4>}, {transform_indices = @transform_1, window_bounds = array<i64: 16, 16>}, {pipeline_mode = #tpu.pipeline_mode<synchronous>, transform_indices = @transform_2, window_bounds = array<i64: 4, 128>}, {pipeline_mode = #tpu.pipeline_mode<synchronous>, transform_indices = @transform_3, window_bounds = array<i64: 1, 128>}, {pipeline_mode = #tpu.pipeline_mode<synchronous>, transform_indices = @transform_4, window_bounds = array<i64: 16, 128>}, {pipeline_mode = #tpu.pipeline_mode<synchronous>, transform_indices = @transform_5, window_bounds = array<i64: 1, 128>}, {pipeline_mode = #tpu.pipeline_mode<synchronous>, transform_indices = @transform_6, window_bounds = array<i64: 128, 128>}, {pipeline_mode = #tpu.pipeline_mode<synchronous>, transform_indices = @transform_7, window_bounds = array<i64: 128, 128>}, {pipeline_mode = #tpu.pipeline_mode<synchronous>, transform_indices = @transform_8, window_bounds = array<i64: 1, 128>}, {pipeline_mode = #tpu.pipeline_mode<synchronous>, transform_indices = @transform_9, window_bounds = array<i64: 128, 128>}, {pipeline_mode = #tpu.pipeline_mode<synchronous>, transform_indices = @transform_10, window_bounds = array<i64: 1, 128>}, {pipeline_mode = #tpu.pipeline_mode<synchronous>, transform_indices = @transform_11, window_bounds = array<i64: 128, 384>}, {pipeline_mode = #tpu.pipeline_mode<synchronous>, transform_indices = @transform_12, window_bounds = array<i64: 1, 384>}, {pipeline_mode = #tpu.pipeline_mode<synchronous>, transform_indices = @transform_13, window_bounds = array<i64: 384, 128>}, {pipeline_mode = #tpu.pipeline_mode<synchronous>, transform_indices = @transform_14, window_bounds = array<i64: 1, 128>}, {transform_indices = @transform_15, window_bounds = array<i64: 16, 128>}]} {
    %c0 = arith.constant 0 : index
    %c0_0 = arith.constant 0 : index
    %0 = vector.load %arg1[%c0, %c0_0] : memref<16x4xf32, #tpu.memory_space<vmem>>, vector<16x4xf32>
    %c0_1 = arith.constant 0 : index
    %c0_2 = arith.constant 0 : index
    %1 = vector.load %arg3[%c0_1, %c0_2] : memref<4x128xf32, #tpu.memory_space<vmem>>, vector<4x128xf32>
    %cst = arith.constant dense<0.000000e+00> : vector<16x128xf32>
    %2 = tpu.matmul %0, %1, %cst {dimension_numbers = #tpu.dot_dimension_numbers<[1], [0], [0], [1], [0, 0, 1, 1], [], []>} : vector<16x4xf32>, vector<4x128xf32>, vector<16x128xf32> -> vector<16x128xf32>
    %c0_3 = arith.constant 0 : index
    %c0_4 = arith.constant 0 : index
    %3 = vector.load %arg4[%c0_3, %c0_4] : memref<1x128xf32, #tpu.memory_space<vmem>>, vector<1x128xf32>
    %4 = vector.broadcast %3 : vector<1x128xf32> to vector<16x128xf32>
    %5 = arith.addf %2, %4 : vector<16x128xf32>
    %cst_5 = arith.constant 0.000000e+00 : f32
    %6 = vector.broadcast %cst_5 : f32 to vector<16x128xf32>
    %7 = arith.maximumf %5, %6 : vector<16x128xf32>
    %c0_6 = arith.constant 0 : index
    %c0_7 = arith.constant 0 : index
    %8 = vector.load %arg2[%c0_6, %c0_7] : memref<16x16xf32, #tpu.memory_space<vmem>>, vector<16x16xf32>
    %c0_8 = arith.constant 0 : index
    %c0_9 = arith.constant 0 : index
    %9 = vector.load %arg5[%c0_8, %c0_9] : memref<16x128xf32, #tpu.memory_space<vmem>>, vector<16x128xf32>
    %cst_10 = arith.constant dense<0.000000e+00> : vector<16x128xf32>
    %10 = tpu.matmul %8, %9, %cst_10 {dimension_numbers = #tpu.dot_dimension_numbers<[1], [0], [0], [1], [0, 0, 1, 1], [], []>} : vector<16x16xf32>, vector<16x128xf32>, vector<16x128xf32> -> vector<16x128xf32>
    %c0_11 = arith.constant 0 : index
    %c0_12 = arith.constant 0 : index
    %11 = vector.load %arg6[%c0_11, %c0_12] : memref<1x128xf32, #tpu.memory_space<vmem>>, vector<1x128xf32>
    %12 = vector.broadcast %11 : vector<1x128xf32> to vector<16x128xf32>
    %13 = arith.addf %10, %12 : vector<16x128xf32>
    %cst_13 = arith.constant 0.000000e+00 : f32
    %14 = vector.broadcast %cst_13 : f32 to vector<16x128xf32>
    %15 = arith.maximumf %13, %14 : vector<16x128xf32>
    %c0_14 = arith.constant 0 : index
    %c0_15 = arith.constant 0 : index
    %16 = vector.load %arg7[%c0_14, %c0_15] : memref<128x128xf32, #tpu.memory_space<vmem>>, vector<128x128xf32>
    %cst_16 = arith.constant dense<0.000000e+00> : vector<16x128xf32>
    %17 = tpu.matmul %7, %16, %cst_16 {dimension_numbers = #tpu.dot_dimension_numbers<[1], [0], [0], [1], [0, 0, 1, 1], [], []>} : vector<16x128xf32>, vector<128x128xf32>, vector<16x128xf32> -> vector<16x128xf32>
    %c0_17 = arith.constant 0 : index
    %c0_18 = arith.constant 0 : index
    %18 = vector.load %arg8[%c0_17, %c0_18] : memref<128x128xf32, #tpu.memory_space<vmem>>, vector<128x128xf32>
    %cst_19 = arith.constant dense<0.000000e+00> : vector<16x128xf32>
    %19 = tpu.matmul %15, %18, %cst_19 {dimension_numbers = #tpu.dot_dimension_numbers<[1], [0], [0], [1], [0, 0, 1, 1], [], []>} : vector<16x128xf32>, vector<128x128xf32>, vector<16x128xf32> -> vector<16x128xf32>
    %20 = arith.addf %17, %19 : vector<16x128xf32>
    %c0_20 = arith.constant 0 : index
    %c0_21 = arith.constant 0 : index
    %21 = vector.load %arg9[%c0_20, %c0_21] : memref<1x128xf32, #tpu.memory_space<vmem>>, vector<1x128xf32>
    %22 = vector.broadcast %21 : vector<1x128xf32> to vector<16x128xf32>
    %23 = arith.addf %20, %22 : vector<16x128xf32>
    %cst_22 = arith.constant 0.000000e+00 : f32
    %24 = vector.broadcast %cst_22 : f32 to vector<16x128xf32>
    %25 = arith.maximumf %23, %24 : vector<16x128xf32>
    %c0_23 = arith.constant 0 : index
    %c0_24 = arith.constant 0 : index
    %26 = vector.load %arg10[%c0_23, %c0_24] : memref<128x128xf32, #tpu.memory_space<vmem>>, vector<128x128xf32>
    %cst_25 = arith.constant dense<0.000000e+00> : vector<16x128xf32>
    %27 = tpu.matmul %25, %26, %cst_25 {dimension_numbers = #tpu.dot_dimension_numbers<[1], [0], [0], [1], [0, 0, 1, 1], [], []>} : vector<16x128xf32>, vector<128x128xf32>, vector<16x128xf32> -> vector<16x128xf32>
    %c0_26 = arith.constant 0 : index
    %c0_27 = arith.constant 0 : index
    %28 = vector.load %arg11[%c0_26, %c0_27] : memref<1x128xf32, #tpu.memory_space<vmem>>, vector<1x128xf32>
    %29 = vector.broadcast %28 : vector<1x128xf32> to vector<16x128xf32>
    %30 = arith.addf %27, %29 : vector<16x128xf32>
    %cst_28 = arith.constant 0.000000e+00 : f32
    %31 = vector.broadcast %cst_28 : f32 to vector<16x128xf32>
    %32 = arith.maximumf %30, %31 : vector<16x128xf32>
    %c0_29 = arith.constant 0 : index
    %c0_30 = arith.constant 0 : index
    %33 = vector.load %arg12[%c0_29, %c0_30] : memref<128x384xf32, #tpu.memory_space<vmem>>, vector<128x384xf32>
    %cst_31 = arith.constant dense<0.000000e+00> : vector<16x384xf32>
    %34 = tpu.matmul %32, %33, %cst_31 {dimension_numbers = #tpu.dot_dimension_numbers<[1], [0], [0], [1], [0, 0, 1, 1], [], []>} : vector<16x128xf32>, vector<128x384xf32>, vector<16x384xf32> -> vector<16x384xf32>
    %c0_32 = arith.constant 0 : index
    %c0_33 = arith.constant 0 : index
    %35 = vector.load %arg13[%c0_32, %c0_33] : memref<1x384xf32, #tpu.memory_space<vmem>>, vector<1x384xf32>
    %36 = vector.broadcast %35 : vector<1x384xf32> to vector<16x384xf32>
    %37 = arith.addf %34, %36 : vector<16x384xf32>
    %cst_34 = arith.constant 0.000000e+00 : f32
    %38 = vector.broadcast %cst_34 : f32 to vector<16x384xf32>
    %39 = arith.maximumf %37, %38 : vector<16x384xf32>
    %c0_35 = arith.constant 0 : index
    %c0_36 = arith.constant 0 : index
    %40 = vector.load %arg14[%c0_35, %c0_36] : memref<384x128xf32, #tpu.memory_space<vmem>>, vector<384x128xf32>
    %cst_37 = arith.constant dense<0.000000e+00> : vector<16x128xf32>
    %41 = tpu.matmul %39, %40, %cst_37 {dimension_numbers = #tpu.dot_dimension_numbers<[1], [0], [0], [1], [0, 0, 1, 1], [], []>} : vector<16x384xf32>, vector<384x128xf32>, vector<16x128xf32> -> vector<16x128xf32>
    %c0_38 = arith.constant 0 : index
    %c0_39 = arith.constant 0 : index
    %42 = vector.load %arg15[%c0_38, %c0_39] : memref<1x128xf32, #tpu.memory_space<vmem>>, vector<1x128xf32>
    %43 = vector.broadcast %42 : vector<1x128xf32> to vector<16x128xf32>
    %44 = arith.addf %41, %43 : vector<16x128xf32>
    %45 = tpu.iota {dimensions = array<i32: 1>} : vector<16x128xi32>
    %c17_i32 = arith.constant 17 : i32
    %46 = vector.broadcast %c17_i32 : i32 to vector<16x128xi32>
    %47 = arith.cmpi eq, %45, %46 : vector<16x128xi32>
    %48 = arith.negf %44 : vector<16x128xf32>
    %49 = math.exp %48 : vector<16x128xf32>
    %cst_40 = arith.constant 1.000000e+00 : f32
    %50 = vector.broadcast %cst_40 : f32 to vector<16x128xf32>
    %51 = arith.addf %50, %49 : vector<16x128xf32>
    %52 = arith.divf %50, %51 : vector<16x128xf32>
    %53 = arith.select %47, %52, %44 : vector<16x128xi1>, vector<16x128xf32>
    %c0_41 = arith.constant 0 : index
    %c0_42 = arith.constant 0 : index
    %54 = vector.load %arg16[%c0_41, %c0_42] : memref<16x128xf32, #tpu.memory_space<vmem>>, vector<16x128xf32>
    tpu.vector_store %arg16[%c0_41, %c0_42], %53 {strides = array<i32>} : memref<16x128xf32, #tpu.memory_space<vmem>>, vector<16x128xf32>,
    return
  }
  func.func @transform_0(%arg0: i32) -> (i32, i32) {
    %c0_i32 = arith.constant 0 : i32
    %c0_i32_0 = arith.constant 0 : i32
    return %arg0, %c0_i32 : i32, i32
  }
  func.func @transform_1(%arg0: i32) -> (i32, i32) {
    %c0_i32 = arith.constant 0 : i32
    %c0_i32_0 = arith.constant 0 : i32
    return %arg0, %c0_i32 : i32, i32
  }
  func.func @transform_2(%arg0: i32) -> (i32, i32) {
    %c0_i32 = arith.constant 0 : i32
    %c0_i32_0 = arith.constant 0 : i32
    %c0_i32_1 = arith.constant 0 : i32
    return %c0_i32, %c0_i32_0 : i32, i32
  }
  func.func @transform_3(%arg0: i32) -> (i32, i32) {
    %c0_i32 = arith.constant 0 : i32
    %c0_i32_0 = arith.constant 0 : i32
    %c0_i32_1 = arith.constant 0 : i32
    return %c0_i32, %c0_i32_0 : i32, i32
  }
  func.func @transform_4(%arg0: i32) -> (i32, i32) {
    %c0_i32 = arith.constant 0 : i32
    %c0_i32_0 = arith.constant 0 : i32
    %c0_i32_1 = arith.constant 0 : i32
    return %c0_i32, %c0_i32_0 : i32, i32
  }
  func.func @transform_5(%arg0: i32) -> (i32, i32) {
    %c0_i32 = arith.constant 0 : i32
    %c0_i32_0 = arith.constant 0 : i32
    %c0_i32_1 = arith.constant 0 : i32
    return %c0_i32, %c0_i32_0 : i32, i32
  }
  func.func @transform_6(%arg0: i32) -> (i32, i32) {
    %c0_i32 = arith.constant 0 : i32
    %c0_i32_0 = arith.constant 0 : i32
    %c0_i32_1 = arith.constant 0 : i32
    return %c0_i32, %c0_i32_0 : i32, i32
  }
  func.func @transform_7(%arg0: i32) -> (i32, i32) {
    %c0_i32 = arith.constant 0 : i32
    %c0_i32_0 = arith.constant 0 : i32
    %c0_i32_1 = arith.constant 0 : i32
    return %c0_i32, %c0_i32_0 : i32, i32
  }
  func.func @transform_8(%arg0: i32) -> (i32, i32) {
    %c0_i32 = arith.constant 0 : i32
    %c0_i32_0 = arith.constant 0 : i32
    %c0_i32_1 = arith.constant 0 : i32
    return %c0_i32, %c0_i32_0 : i32, i32
  }
  func.func @transform_9(%arg0: i32) -> (i32, i32) {
    %c0_i32 = arith.constant 0 : i32
    %c0_i32_0 = arith.constant 0 : i32
    %c0_i32_1 = arith.constant 0 : i32
    return %c0_i32, %c0_i32_0 : i32, i32
  }
  func.func @transform_10(%arg0: i32) -> (i32, i32) {
    %c0_i32 = arith.constant 0 : i32
    %c0_i32_0 = arith.constant 0 : i32
    %c0_i32_1 = arith.constant 0 : i32
    return %c0_i32, %c0_i32_0 : i32, i32
  }
  func.func @transform_11(%arg0: i32) -> (i32, i32) {
    %c0_i32 = arith.constant 0 : i32
    %c0_i32_0 = arith.constant 0 : i32
    %c0_i32_1 = arith.constant 0 : i32
    return %c0_i32, %c0_i32_0 : i32, i32
  }
  func.func @transform_12(%arg0: i32) -> (i32, i32) {
    %c0_i32 = arith.constant 0 : i32
    %c0_i32_0 = arith.constant 0 : i32
    %c0_i32_1 = arith.constant 0 : i32
    return %c0_i32, %c0_i32_0 : i32, i32
  }
  func.func @transform_13(%arg0: i32) -> (i32, i32) {
    %c0_i32 = arith.constant 0 : i32
    %c0_i32_0 = arith.constant 0 : i32
    %c0_i32_1 = arith.constant 0 : i32
    return %c0_i32, %c0_i32_0 : i32, i32
  }
  func.func @transform_14(%arg0: i32) -> (i32, i32) {
    %c0_i32 = arith.constant 0 : i32
    %c0_i32_0 = arith.constant 0 : i32
    %c0_i32_1 = arith.constant 0 : i32
    return %c0_i32, %c0_i32_0 : i32, i32
  }
  func.func @transform_15(%arg0: i32) -> (i32, i32) {
    %c0_i32 = arith.constant 0 : i32
    %c0_i32_0 = arith.constant 0 : i32
    return %arg0, %c0_i32 : i32, i32
  }
}

</mosaic_0001>

<bundles_post_ra>
// kernel: tpu_custom_call.1
= control target key start
LH: loop header
LB: loop body
LE: loop exit
PB: predicated region body
PF: predicated region fallthrough
CT: control target
= control target key end

     0   :  { %20 = vsyncpa [#allocation3], 0  ;;  %s2105_s0 = inlined_call_operand.vmem [shape: f32[16,4], index: 0, kind: input, shape index: {}]   ;;  %s2106_s1 = inlined_call_operand.vmem [shape: f32[16,16], index: 1, kind: input, shape index: {}]   ;;  %s2107_s2 = inlined_call_operand.hbm [shape: f32[4,128], index: 2, kind: input, shape index: {}]   ;;  %s2108_s3 = inlined_call_operand.hbm [shape: f32[1,128], index: 3, kind: input, shape index: {}]   ;;  %s2109_s4 = inlined_call_operand.vmem [shape: f32[16,128], index: 4, kind: input, shape index: {}]   ;;  %s2110_s5 = inlined_call_operand.vmem [shape: f32[1,128], index: 5, kind: input, shape index: {}]   ;;  %s2111_s6 = inlined_call_operand.hbm [shape: f32[128,128], index: 6, kind: input, shape index: {}]   ;;  %s2112_s7 = inlined_call_operand.hbm [shape: f32[128,128], index: 7, kind: input, shape index: {}]   ;;  %s2113_s8 = inlined_call_operand.vmem [shape: f32[1,128], index: 8, kind: input, shape index: {}]   ;;  %s2114_s9 = inlined_call_operand.hbm [shape: f32[128,128], index: 9, kind: input, shape index: {}]   ;;  %s2115_s10 = inlined_call_operand.vmem [shape: f32[1,128], index: 10, kind: input, shape index: {}]   ;;  %s2116_s11 = inlined_call_operand.hbm [shape: f32[128,384], index: 11, kind: input, shape index: {}]   ;;  %s2117_s12 = inlined_call_operand.vmem [shape: f32[1,384], index: 12, kind: input, shape index: {}]   ;;  %s2118_s13 = inlined_call_operand.hbm [shape: f32[384,128], index: 13, kind: input, shape index: {}]   ;;  %s2119_s14 = inlined_call_operand.vmem [shape: f32[1,128], index: 14, kind: input, shape index: {}]   ;;  %s2120_s15 = inlined_call_operand.hbm [shape: f32[16,128], index: 15, kind: output, shape index: {}]  }
   0x1   :  { %21 = vsyncpa [#allocation6], 0 }
   0x2   :  { %22 = vsyncpa [#allocation9], 0 }
   0x3   :  { %23 = vsyncpa [#allocation12], 0 }
   0x4   :  { %24 = vsyncpa [#allocation4], 0  ;;  %s1866_s18 = smov [#allocation5]   ;;  %s1680_s22 = scalar_lea.hbm %s2108_s3, 16 }
   0x5   :  { %s45_s19 = sshll.u32 %s1866_s18, 4  ;;  %p1681_p0 = scmp.ne.s32.totalorder %s2108_s3, %s1680_s22  ;;  %s46_s19 = int_to_ptr.vmem [resolvable:$true] %s45_s19 }
   0x6   :  { %p1684_p1 = scmp.lt.u32.totalorder %s1680_s22, %s2108_s3 }
   0x8   :  { %p1686_p2 = pnand %p1684_p1, %p1681_p0 }
   0xa   :  { %1689 = shalt.err (!%p1686_p2)
}
   0xb   :  { %s1690_s27 = scalar_lea.vmem %s46_s19, 16  ;;  %s1694_s28 = scalar_lea.vmem %s46_s19, 32 }
   0xc   :  { %p1691_p3 = scmp.ne.s32.totalorder %s46_s19, %s1690_s27  ;;  %p1695_p4 = scmp.lt.s32.totalorder %s46_s19, %s46_s19 }
   0xd   :  { %p1696_p5 = scmp.lt.s32.totalorder %s1694_s28, %s1690_s27 }
   0xf   :  { %p1697_p6 = por %p1696_p5, %p1695_p4 }
  0x11   :  { %p1698_p7 = pnand %p1697_p6, %p1691_p3 }
  0x13   :  { %1701 = shalt.err (!%p1698_p7)
}
  0x14   :  { %48 = dma.hbm_to_vmem [thread:$0]  %s2108_s3, 16, %s46_s19, [#allocation6]  }
  0x15   :  { %s1867_s16 = smov [#allocation8]   ;;  %s1868_s18 = smov [#allocation11]  }
  0x16   :  { %s70_s17 = sshll.u32 %s1867_s16, 4  ;;  %s98_s20 = sshll.u32 %s1868_s18, 4  ;;  %s71_s17 = int_to_ptr.vmem [resolvable:$true] %s70_s17  ;;  %s99_s20 = int_to_ptr.vmem [resolvable:$true] %s98_s20 }
  0x17   :  { %s1702_s23 = scalar_lea.hbm %s2112_s7, 2048 }
  0x18   :  { %p1703_p8 = scmp.ne.s32.totalorder %s2112_s7, %s1702_s23  ;;  %p1706_p9 = scmp.lt.u32.totalorder %s1702_s23, %s2112_s7 }
  0x1a   :  { %p1708_p10 = pnand %p1706_p9, %p1703_p8 }
  0x1c   :  { %1711 = shalt.err (!%p1708_p10)
}
  0x1d   :  { %s1712_s3 = scalar_lea.vmem %s71_s17, 2048  ;;  %p1717_p12 = scmp.lt.s32.totalorder %s71_s17, %s71_s17 }
  0x1e   :  { %p1713_p11 = scmp.ne.s32.totalorder %s71_s17, %s1712_s3  ;;  %p1718_p13 = scmp.lt.s32.totalorder %s1712_s3, %s1712_s3 }
  0x20   :  { %p1719_p0 = por %p1718_p13, %p1717_p12 }
  0x22   :  { %p1720_p1 = pnand %p1719_p0, %p1713_p11 }
  0x24   :  { %1723 = shalt.err (!%p1720_p1)
}
  0x25   :  { %s2121_s19 = smov 128   ;;  %s1870_s28 = smov 8  }
  0x26   :  { %76 = dma.hbm_to_vmem [thread:$0]  %s2112_s7, 2048, %s71_s17, [#allocation9], %s2121_s19, %s2121_s19, %s1870_s28  }
  0x27   :  { %s1724_s21 = scalar_lea.hbm %s2116_s11, 6144 }
  0x28   :  { %p1725_p2 = scmp.ne.s32.totalorder %s2116_s11, %s1724_s21  ;;  %p1728_p3 = scmp.lt.u32.totalorder %s1724_s21, %s2116_s11 }
  0x2a   :  { %p1730_p4 = pnand %p1728_p3, %p1725_p2 }
  0x2c   :  { %1733 = shalt.err (!%p1730_p4)
}
  0x2d   :  { %s1734_s26 = scalar_lea.vmem %s99_s20, 6144  ;;  %p1739_p6 = scmp.lt.s32.totalorder %s99_s20, %s99_s20 }
  0x2e   :  { %p1735_p5 = scmp.ne.s32.totalorder %s99_s20, %s1734_s26  ;;  %p1740_p7 = scmp.lt.s32.totalorder %s1734_s26, %s1734_s26 }
  0x30   :  { %p1741_p8 = por %p1740_p7, %p1739_p6 }
  0x32   :  { %p1742_p9 = pnand %p1741_p8, %p1735_p5 }
  0x34   :  { %1745 = shalt.err (!%p1742_p9)
}
  0x35   :  { %s1871_s7 = smov 384   ;;  %s1872_s17 = smov 24  }
  0x36   :  { %104 = dma.hbm_to_vmem [thread:$0]  %s2116_s11, 6144, %s99_s20, [#allocation12], %s1871_s7, %s1871_s7, %s1872_s17  }
  0x37   :  { %s1873_s29 = smov [#allocation2]   ;;  %s1874_s16 = smov [#allocation7]  }
  0x38   :  { %s35_s30 = sshll.u32 %s1873_s29, 4  ;;  %s58_s18 = sshll.u32 %s1874_s16, 4  ;;  %s36_s30 = int_to_ptr.vmem [resolvable:$true] %s35_s30  ;;  %s59_s18 = int_to_ptr.vmem [resolvable:$true] %s58_s18 }
  0x39   :  { %s1746_s23 = scalar_lea.hbm %s2107_s2, 64 }
  0x3a   :  { %p1747_p10 = scmp.ne.s32.totalorder %s2107_s2, %s1746_s23  ;;  %p1750_p11 = scmp.lt.u32.totalorder %s1746_s23, %s2107_s2 }
  0x3c   :  { %p1752_p12 = pnand %p1750_p11, %p1747_p10 }
  0x3e   :  { %1755 = shalt.err (!%p1752_p12)
}
  0x3f   :  { %s1756_s11 = scalar_lea.vmem %s36_s30, 64  ;;  %p1761_p0 = scmp.lt.s32.totalorder %s36_s30, %s36_s30 }
  0x40   :  { %p1757_p13 = scmp.ne.s32.totalorder %s36_s30, %s1756_s11  ;;  %p1762_p1 = scmp.lt.s32.totalorder %s1756_s11, %s1756_s11 }
  0x42   :  { %p1763_p2 = por %p1762_p1, %p1761_p0 }
  0x44   :  { %p1764_p3 = pnand %p1763_p2, %p1757_p13 }
  0x46   :  { %1767 = shalt.err (!%p1764_p3)
}
  0x47   :  { %38 = dma.hbm_to_vmem [thread:$0]  %s2107_s2, 64, %s36_s30, [#allocation3]  }
  0x48   :  { %s1768_s3 = scalar_lea.hbm %s2111_s6, 2048 }
  0x49   :  { %p1769_p4 = scmp.ne.s32.totalorder %s2111_s6, %s1768_s3  ;;  %p1772_p5 = scmp.lt.u32.totalorder %s1768_s3, %s2111_s6 }
  0x4b   :  { %p1774_p6 = pnand %p1772_p5, %p1769_p4 }
  0x4d   :  { %1777 = shalt.err (!%p1774_p6)
}
  0x4e   :  { %s1778_s22 = scalar_lea.vmem %s59_s18, 2048  ;;  %p1783_p8 = scmp.lt.s32.totalorder %s59_s18, %s59_s18 }
  0x4f   :  { %p1779_p7 = scmp.ne.s32.totalorder %s59_s18, %s1778_s22  ;;  %p1784_p9 = scmp.lt.s32.totalorder %s1778_s22, %s1778_s22 }
  0x51   :  { %p1785_p10 = por %p1784_p9, %p1783_p8 }
  0x53   :  { %p1786_p11 = pnand %p1785_p10, %p1779_p7 }
  0x55   :  { %1789 = shalt.err (!%p1786_p11)
}
  0x56   :  { %s2123_s2 = smov 128   ;;  %s1875_s24 = smov [#allocation10]  }
  0x57   :  { %64 = dma.hbm_to_vmem [thread:$0]  %s2111_s6, 2048, %s59_s18, [#allocation6], %s2123_s2, %s2123_s2, %s1870_s28  }
  0x58   :  { %s84_s25 = sshll.u32 %s1875_s24, 4  ;;  %s1876_s26 = smov [#allocation13]   ;;  %s85_s25 = int_to_ptr.vmem [resolvable:$true] %s84_s25 }
  0x59   :  { %s112_s11 = sshll.u32 %s1876_s26, 4  ;;  %s1790_s17 = scalar_lea.hbm %s2114_s9, 2048  ;;  %s113_s11 = int_to_ptr.vmem [resolvable:$true] %s112_s11 }
  0x5a   :  { %p1791_p12 = scmp.ne.s32.totalorder %s2114_s9, %s1790_s17  ;;  %p1794_p13 = scmp.lt.u32.totalorder %s1790_s17, %s2114_s9 }
  0x5c   :  { %p1796_p0 = pnand %p1794_p13, %p1791_p12 }
  0x5e   :  { %1799 = shalt.err (!%p1796_p0)
}
  0x5f   :  { %s1800_s6 = scalar_lea.vmem %s85_s25, 2048  ;;  %p1805_p2 = scmp.lt.s32.totalorder %s85_s25, %s85_s25 }
  0x60   :  { %p1801_p1 = scmp.ne.s32.totalorder %s85_s25, %s1800_s6  ;;  %p1806_p3 = scmp.lt.s32.totalorder %s1800_s6, %s1800_s6 }
  0x62   :  { %p1807_p4 = por %p1806_p3, %p1805_p2 }
  0x64   :  { %p1808_p5 = pnand %p1807_p4, %p1801_p1 }
  0x66   :  { %1811 = shalt.err (!%p1808_p5)
}
  0x67   :  { %90 = dma.hbm_to_vmem [thread:$0]  %s2114_s9, 2048, %s85_s25, [#allocation9], %s2123_s2, %s2123_s2, %s1870_s28  }
  0x68   :  { %s1812_s30 = scalar_lea.hbm %s2118_s13, 6144 }
  0x69   :  { %p1813_p6 = scmp.ne.s32.totalorder %s2118_s13, %s1812_s30  ;;  %p1816_p7 = scmp.lt.u32.totalorder %s1812_s30, %s2118_s13 }
  0x6b   :  { %p1818_p8 = pnand %p1816_p7, %p1813_p6 }
  0x6d   :  { %1821 = shalt.err (!%p1818_p8)
}
  0x6e   :  { %s1822_s7 = scalar_lea.vmem %s113_s11, 6144  ;;  %p1827_p10 = scmp.lt.s32.totalorder %s113_s11, %s113_s11 }
  0x6f   :  { %p1823_p9 = scmp.ne.s32.totalorder %s113_s11, %s1822_s7  ;;  %p1828_p11 = scmp.lt.s32.totalorder %s1822_s7, %s1822_s7 }
  0x71   :  { %p1829_p12 = por %p1828_p11, %p1827_p10 }
  0x73   :  { %p1830_p13 = pnand %p1829_p12, %p1823_p9 }
  0x75   :  { %1833 = shalt.err (!%p1830_p13)
}
  0x76   :  { %118 = dma.hbm_to_vmem [thread:$0]  %s2118_s13, 6144, %s113_s11, [#allocation12], %s2123_s2, %s2123_s2, %s1870_s28  }
  0x77   :  { %1856 = dma.done.wait [#allocation3], 64  }
  0x78   :  { %1857 = vsyncadd [#allocation3], 4294967232 }
  0x79   :  { %1858 = dma.done.wait [#allocation6], 2064  }
  0x7a   :  { %1859 = vsyncadd [#allocation6], 4294965232 }
  0x7b   :  { %1860 = dma.done.wait [#allocation9], 4096  }
  0x7c   :  { %1861 = vsyncadd [#allocation9], 4294963200 }
  0x7d   :  { %1862 = dma.done.wait [#allocation12], 12288  }
  0x7e   :  { %1863 = vsyncadd [#allocation12], 4294955008  ;;  %vm159_vm0 = vcmask 1043456   ;;  %vm152_vm1 = vcmask 31744   ;;  %v144_v0 = vld [vmem:[#allocation2] sm:$0xf] }
  0x7f   :  { %v142_v1 = vld [vmem:[%s2105_s0] sm:$0xff]  ;;  %v143_v2 = vld [vmem:[%s2105_s0 + $0x8] sm:$0xff]  ;;  %1242 = vmatprep.subr.msk.mxu1 %vm159_vm0, %v144_v0  ;;  %vm251_vm2 = vcmask 130048   ;;  %v353_v10 = vld [vmem:[#allocation8 + $0x10] sm:$0xff] }
  0x80   :  { %1244 = vmatprep.mubr.msk.f32.mxu1 %vm152_vm1, %v142_v1  ;;  %v242_v3 = vld [vmem:[%s2109_s4] sm:$0xff]  ;;  %v243_v4 = vld [vmem:[%s2109_s4 + $0x8] sm:$0xff]  ;;  %1243 = vmatpush3.msk.msra.mxu1 %vm159_vm0, %v144_v0  ;;  %v357_v17 = vld [vmem:[#allocation8 + $0x30] sm:$0xff] }
  0x81   :  { %v240_v5 = vld [vmem:[%s2106_s1] sm:$0xff]  ;;  %v1429_v6 = vpack.c.bf16 %v243_v4, %v242_v3  ;;  %v352_v8 = vld [vmem:[#allocation8 + $0x8] sm:$0xff]  ;;  %1245 = vmatmul.mubr.msk.f32.vlgmr.msra.gmra.mrb[0].mxu1 %vm152_vm1, %v143_v2  ;;  %v361_v23 = vld [vmem:[#allocation8 + $0x50] sm:$0xff] }
  0x82   :  { %v351_v7 = vld [vmem:[#allocation8] sm:$0xff]  ;;  %v354_v11 = vld [vmem:[#allocation8 + $0x18] sm:$0xff]  ;;  %1251 = vmatprep.mubr.msk.f32.mxu1 %vm251_vm2, %v240_v5  ;;  %v356_v14 = vld [vmem:[#allocation8 + $0x28] sm:$0xff] }
  0x83   :  { %v1433_v9 = vpack.c.bf16 %v352_v8, %v351_v7  ;;  %1430 = vmatprep.subr.bf16.mxu1 %v1429_v6  ;;  %v1437_v12 = vpack.c.bf16 %v354_v11, %v353_v10  ;;  %v355_v13 = vld [vmem:[#allocation8 + $0x20] sm:$0xff]  ;;  %v358_v18 = vld [vmem:[#allocation8 + $0x38] sm:$0xff]  ;;  %v360_v21 = vld [vmem:[#allocation8 + $0x48] sm:$0xff] }
  0x84   :  { %1432 = vmatpush3.bf16.msra.mxu1 %v1429_v6  ;;  %v241_v15 = vld [vmem:[%s2106_s1 + $0x8] sm:$0xff]  ;;  %v1441_v16 = vpack.c.bf16 %v356_v14, %v355_v13  ;;  %v1445_v19 = vpack.c.bf16 %v358_v18, %v357_v17  ;;  %v362_v24 = vld [vmem:[#allocation8 + $0x58] sm:$0xff]  ;;  %v365_v29 = vld [vmem:[#allocation8 + $0x70] sm:$0xff] }
  0x85   :  { %1434 = vmatprep.subr.bf16.mxu0 %v1433_v9  ;;  %v359_v20 = vld [vmem:[#allocation8 + $0x40] sm:$0xff]  ;;  %v1453_v25 = vpack.c.bf16 %v362_v24, %v361_v23  ;;  %v364_v27 = vld [vmem:[#allocation8 + $0x68] sm:$0xff]  ;;  %v366_v30 = vld [vmem:[#allocation8 + $0x78] sm:$0xff] }
  0x86   :  { %1436 = vmatpush3.bf16.msra.mxu0 %v1433_v9  ;;  %v1449_v22 = vpack.c.bf16 %v360_v21, %v359_v20  ;;  %v363_v26 = vld [vmem:[#allocation8 + $0x60] sm:$0xff]  ;;  %v1461_v31 = vpack.c.bf16 %v366_v30, %v365_v29  ;;  %v336_v33 = vld [vmem:[#allocation7 + $0x8] sm:$0xff]  ;;  %v530_v37 = vld [vmem:[#allocation10 + $0x10] sm:$0xff] }
  0x87   :  { %1438 = vmatprep.subr.bf16.mxu0 %v1437_v12  ;;  %1252 = vmatmul.mubr.msk.f32.vlgmr.msra.gmra.mrb[2].mxu1 %vm251_vm2, %v241_v15  ;;  %v1457_v28 = vpack.c.bf16 %v364_v27, %v363_v26  ;;  %v335_v32 = vld [vmem:[#allocation7] sm:$0xff]  ;;  %v529_v36 = vld [vmem:[#allocation10 + $0x8] sm:$0xff]  ;;  %v531_v39 = vld [vmem:[#allocation10 + $0x18] sm:$0xff] }
  0x88   :  { %v1465_v34 = vpack.c.bf16 %v336_v33, %v335_v32  ;;  %v528_v35 = vld [vmem:[#allocation10] sm:$0xff]  ;;  %v1501_v40 = vpack.c.bf16 %v531_v39, %v530_v37  ;;  %v533_v42 = vld [vmem:[#allocation10 + $0x28] sm:$0xff]  ;;  %v534_v44 = vld [vmem:[#allocation10 + $0x30] sm:$0xff] }
  0x89   :  { %v1497_v38 = vpack.c.bf16 %v529_v36, %v528_v35  ;;  %v532_v41 = vld [vmem:[#allocation10 + $0x20] sm:$0xff]  ;;  %v535_v45 = vld [vmem:[#allocation10 + $0x38] sm:$0xff]  ;;  %v537_v48 = vld [vmem:[#allocation10 + $0x48] sm:$0xff] }
  0x8a   :  { %1440 = vmatpush3.bf16.msra.mxu0 %v1437_v12  ;;  %v1505_v43 = vpack.c.bf16 %v533_v42, %v532_v41  ;;  %v1509_v46 = vpack.c.bf16 %v535_v45, %v534_v44  ;;  %v536_v47 = vld [vmem:[#allocation10 + $0x40] sm:$0xff]  ;;  %v538_v50 = vld [vmem:[#allocation10 + $0x50] sm:$0xff]  ;;  %v539_v51 = vld [vmem:[#allocation10 + $0x58] sm:$0xff] }
  0x8b   :  { %1442 = vmatprep.subr.bf16.mxu0 %v1441_v16  ;;  %1498 = vmatprep.subr.bf16.mxu1 %v1497_v38  ;;  %v1513_v49 = vpack.c.bf16 %v537_v48, %v536_v47  ;;  %v1517_v52 = vpack.c.bf16 %v539_v51, %v538_v50  ;;  %v540_v53 = vld [vmem:[#allocation10 + $0x60] sm:$0xff]  ;;  %v541_v54 = vld [vmem:[#allocation10 + $0x68] sm:$0xff]  ;;  %v1099_v58 = vld [vmem:[%s2110_s5] ss:$0 sm:$0xff] }
  0x8c   :  { %1500 = vmatpush3.bf16.msra.mxu1 %v1497_v38  ;;  %v1521_v55 = vpack.c.bf16 %v541_v54, %v540_v53  ;;  %v1095_v59 = vld [vmem:[#allocation5] ss:$0 sm:$0xff]  ;;  %v337_v1 = vld [vmem:[#allocation7 + $0x10] sm:$0xff]  ;;  %v339_v7 = vld [vmem:[#allocation7 + $0x20] sm:$0xff] }
  0x8d   :  { %1502 = vmatprep.subr.bf16.mxu1 %v1501_v40  ;;  %v338_v2 = vld [vmem:[#allocation7 + $0x18] sm:$0xff]  ;;  %v340_v8 = vld [vmem:[#allocation7 + $0x28] sm:$0xff]  ;;  %v341_v10 = vld [vmem:[#allocation7 + $0x30] sm:$0xff] }
  0x8e   :  { %1444 = vmatpush3.bf16.msra.mxu0 %v1441_v16  ;;  %v1469_v5 = vpack.c.bf16 %v338_v2, %v337_v1  ;;  %v1473_v9 = vpack.c.bf16 %v340_v8, %v339_v7  ;;  %v342_v11 = vld [vmem:[#allocation7 + $0x38] sm:$0xff]  ;;  %v343_v13 = vld [vmem:[#allocation7 + $0x40] sm:$0xff]  ;;  %v344_v14 = vld [vmem:[#allocation7 + $0x48] sm:$0xff] }
  0x8f   :  { %1446 = vmatprep.subr.bf16.mxu0 %v1445_v19  ;;  %v1477_v12 = vpack.c.bf16 %v342_v11, %v341_v10  ;;  %v1481_v15 = vpack.c.bf16 %v344_v14, %v343_v13  ;;  %v345_v16 = vld [vmem:[#allocation7 + $0x50] sm:$0xff]  ;;  %v346_v17 = vld [vmem:[#allocation7 + $0x58] sm:$0xff]  ;;  %v348_v20 = vld [vmem:[#allocation7 + $0x68] sm:$0xff] }
  0x90   :  { %1504 = vmatpush3.bf16.msra.mxu1 %v1501_v40  ;;  %v1485_v18 = vpack.c.bf16 %v346_v17, %v345_v16  ;;  %v350_v23 = vld [vmem:[#allocation7 + $0x78] sm:$0xff]  ;;  %v542_v27 = vld [vmem:[#allocation10 + $0x70] sm:$0xff]  ;;  %v629_v30 = vld [vmem:[#allocation11 + $0x8] sm:$0xff] }
  0x91   :  { %1506 = vmatprep.subr.bf16.mxu1 %v1505_v43  ;;  %v630_v33 = vld [vmem:[#allocation11 + $0x10] sm:$0xff]  ;;  %v636_v36 = vld [vmem:[#allocation11 + $0x40] sm:$0xff]  ;;  %v639_v37 = vld [vmem:[#allocation11 + $0x58] sm:$0xff] }
  0x92   :  { %1448 = vmatpush3.bf16.msra.mxu0 %v1445_v19  ;;  %v347_v19 = vld [vmem:[#allocation7 + $0x60] sm:$0xff]  ;;  %v1565_v38 = vpack.c.bf16 %v639_v37, %v636_v36  ;;  %v642_v39 = vld [vmem:[#allocation11 + $0x70] sm:$0xff]  ;;  %v645_v40 = vld [vmem:[#allocation11 + $0x88] sm:$0xff] }
  0x93   :  { %1450 = vmatprep.subr.bf16.mxu0 %v1449_v22  ;;  %v1489_v21 = vpack.c.bf16 %v348_v20, %v347_v19  ;;  %v1569_v41 = vpack.c.bf16 %v645_v40, %v642_v39  ;;  %v648_v42 = vld [vmem:[#allocation11 + $0xa0] sm:$0xff]  ;;  %v654_v45 = vld [vmem:[#allocation11 + $0xd0] sm:$0xff]  ;;  %v1102_v54 = vld [vmem:[%s2113_s8] ss:$0 sm:$0xff] }
  0x94   :  { %1508 = vmatpush3.bf16.msra.mxu1 %v1505_v43  ;;  %v651_v43 = vld [vmem:[#allocation11 + $0xb8] sm:$0xff]  ;;  %v660_v48 = vld [vmem:[#allocation11 + $0x100] sm:$0xff]  ;;  %v666_v51 = vld [vmem:[#allocation11 + $0x130] sm:$0xff] }
  0x95   :  { %1510 = vmatprep.subr.bf16.mxu1 %v1509_v46  ;;  %v1573_v44 = vpack.c.bf16 %v651_v43, %v648_v42  ;;  %v643_v10 = vld [vmem:[#allocation11 + $0x78] sm:$0xff]  ;;  %v649_v16 = vld [vmem:[#allocation11 + $0xa8] sm:$0xff]  ;;  %v674_v37 = vld [vmem:[#allocation11 + $0x170] sm:$0xff] }
  0x96   :  { %1452 = vmatpush3.bf16.msra.mxu0 %v1449_v22  ;;  %v349_v22 = vld [vmem:[#allocation7 + $0x70] sm:$0xff]  ;;  %v647_v11 = vld [vmem:[#allocation11 + $0x98] sm:$0xff]  ;;  %v653_v17 = vld [vmem:[#allocation11 + $0xc8] sm:$0xff] }
  0x97   :  { %1454 = vmatprep.subr.bf16.mxu0 %v1453_v25  ;;  %v1493_v24 = vpack.c.bf16 %v350_v23, %v349_v22  ;;  %v655_v22 = vld [vmem:[#allocation11 + $0xd8] sm:$0xff]  ;;  %v670_v39 = vld [vmem:[#allocation11 + $0x150] sm:$0xff]  ;;  %v673_v40 = vld [vmem:[#allocation11 + $0x168] sm:$0xff] }
  0x98   :  { %1512 = vmatpush3.bf16.msra.mxu1 %v1509_v46  ;;  %v657_v46 = vld [vmem:[#allocation11 + $0xe8] sm:$0xff]  ;;  %v659_v23 = vld [vmem:[#allocation11 + $0xf8] sm:$0xff]  ;;  %v672_v42 = vld [vmem:[#allocation11 + $0x160] sm:$0xff] }
  0x99   :  { %1514 = vmatprep.subr.bf16.mxu1 %v1513_v49  ;;  %v1577_v47 = vpack.c.bf16 %v657_v46, %v654_v45  ;;  %v671_v36 = vld [vmem:[#allocation11 + $0x158] sm:$0xff]  ;;  %v1877_v45 = vmov 0.0   ;;  %v867_v46 = vld [vmem:[#allocation13 + $0x80] sm:$0xff] }
  0x9a   :  { %1456 = vmatpush3.bf16.msra.mxu0 %v1453_v25  ;;  %v675_v43 = vld [vmem:[#allocation11 + $0x178] sm:$0xff] }
  0x9b   :  { %1458 = vmatprep.subr.bf16.mxu0 %v1457_v28 }
  0x9c   :  { %1516 = vmatpush3.bf16.msra.mxu1 %v1513_v49  ;;  %v663_v49 = vld [vmem:[#allocation11 + $0x118] sm:$0xff] }
  0x9d   :  { %1518 = vmatprep.subr.bf16.mxu1 %v1517_v52  ;;  %v1581_v50 = vpack.c.bf16 %v663_v49, %v660_v48  ;;  %v883_v49 = vld [vmem:[#allocation13 + $0x100] sm:$0xff] }
  0x9e   :  { %1460 = vmatpush3.bf16.msra.mxu0 %v1457_v28  ;;  %v543_v28 = vld [vmem:[#allocation10 + $0x78] sm:$0xff] }
  0x9f   :  { %1462 = vmatprep.subr.bf16.mxu0 %v1461_v31  ;;  %v1525_v29 = vpack.c.bf16 %v543_v28, %v542_v27  ;;  %v658_v27 = vld [vmem:[#allocation11 + $0xf0] sm:$0xff]  ;;  %v661_v28 = vld [vmem:[#allocation11 + $0x108] sm:$0xff] }
  0xa0   :  { %1520 = vmatpush3.bf16.msra.mxu1 %v1517_v52  ;;  %v669_v52 = vld [vmem:[#allocation11 + $0x148] sm:$0xff] }
  0xa1   :  { %1522 = vmatprep.subr.bf16.mxu1 %v1521_v55  ;;  %v1585_v53 = vpack.c.bf16 %v669_v52, %v666_v51  ;;  %v1103_v52 = vld [vmem:[%s2115_s10] ss:$0 sm:$0xff] }
  0xa2   :  { %1464 = vmatpush3.bf16.msra.mxu0 %v1461_v31  ;;  %v632_v31 = vld [vmem:[#allocation11 + $0x20] sm:$0xff] }
  0xa3   :  { %1466 = vmatprep.subr.bf16.mxu0 %v1465_v34  ;;  %v1529_v32 = vpack.c.bf16 %v632_v31, %v629_v30  ;;  %v668_v30 = vld [vmem:[#allocation11 + $0x140] sm:$0xff]  ;;  %v1551_v31 = vpack.c.bf16 %v661_v28, %v658_v27  ;;  %v892_v27 = vld [vmem:[#allocation13 + $0x148] sm:$0xff] }
  0xa4   :  { %1524 = vmatpush3.bf16.msra.mxu1 %v1521_v55 }
  0xa5   :  { %1526 = vmatprep.subr.bf16.mxu1 %v1525_v29 }
  0xa8   :  { %1528 = vmatpush3.bf16.msra.mxu1 %v1525_v29  ;;  %v665_v29 = vld [vmem:[#allocation11 + $0x128] sm:$0xff] }
  0xa9   :  { %1530 = vmatprep.subr.bf16.mxu1 %v1529_v32  ;;  %v1553_v32 = vpack.c.bf16 %v668_v30, %v665_v29  ;;  %v859_v30 = vld [vmem:[#allocation13 + $0x40] sm:$0xff] }
 0x154   :  { %v1246_v56 = vpop.f32.mrb[0].mxu1 }
 0x155   :  { %v229_v57 = vpop.f32.mrb[1].mxu1  ;;  %v235_v25 = vadd.f32 %v1246_v56, %v1095_v59 }
 0x156   :  { %v230_v63 = vadd.f32 %v1095_v59, %v229_v57  ;;  %v631_v59 = vld [vmem:[#allocation11 + $0x18] sm:$0xff] }
 0x157   :  { %v239_v26 = vmax.f32 %v235_v25, 0.0 }
 0x158   :  { %v238_v6 = vmax.f32 %v230_v63, 0.0 }
 0x15a   :  { %v1253_v60 = vpop.f32.mrb[2].mxu1 }
 0x15b   :  { %v330_v61 = vadd.f32 %v1253_v60, %v1099_v58  ;;  %v324_v62 = vpop.f32.mrb[3].mxu1 }
 0x15c   :  { %v325_v0 = vadd.f32 %v1099_v58, %v324_v62  ;;  %v628_v58 = vld [vmem:[#allocation11] sm:$0xff]  ;;  %v638_v62 = vld [vmem:[#allocation11 + $0x50] sm:$0xff] }
 0x15d   :  { %v334_v4 = vmax.f32 %v330_v61, 0.0  ;;  %v635_v61 = vld [vmem:[#allocation11 + $0x38] sm:$0xff] }
 0x15e   :  { %v333_v3 = vmax.f32 %v325_v0, 0.0  ;;  %v1531_v0 = vpack.c.bf16 %v631_v59, %v628_v58  ;;  %v1533_v2 = vpack.c.bf16 %v638_v62, %v635_v61  ;;  %v869_v58 = vld [vmem:[#allocation13 + $0x90] sm:$0xff]  ;;  %v886_v62 = vld [vmem:[#allocation13 + $0x118] sm:$0xff] }
 0x15f   :  { %v885_v61 = vld [vmem:[#allocation13 + $0x110] sm:$0xff] }
 0x160   :  { %1286 = vmatprep.mubr.f32.mxu0 %v333_v3  ;;  %v634_v3 = vld [vmem:[#allocation11 + $0x30] sm:$0xff] }
 0x161   :  { %1287 = vmatmul.mubr.f32.vlgmr.msra.gmra.mrb[0].mxu0 %v334_v4  ;;  %v637_v4 = vld [vmem:[#allocation11 + $0x48] sm:$0xff] }
 0x162   :  { %1468 = vmatpush3.bf16.msra.mxu0 %v1465_v34  ;;  %1321 = vmatprep.mubr.f32.mxu0 %v238_v6  ;;  %v633_v34 = vld [vmem:[#allocation11 + $0x28] sm:$0xff]  ;;  %v644_v6 = vld [vmem:[#allocation11 + $0x80] sm:$0xff]  ;;  %v1535_v7 = vpack.c.bf16 %v637_v4, %v634_v3  ;;  %v853_v3 = vld [vmem:[#allocation13 + $0x10] sm:$0xff] }
 0x163   :  { %1470 = vmatprep.subr.bf16.mxu0 %v1469_v5  ;;  %v1561_v35 = vpack.c.bf16 %v633_v34, %v630_v33  ;;  %v664_v33 = vld [vmem:[#allocation11 + $0x120] sm:$0xff]  ;;  %v667_v34 = vld [vmem:[#allocation11 + $0x138] sm:$0xff] }
 0x164   :  { %v854_v4 = vld [vmem:[#allocation13 + $0x18] sm:$0xff] }
 0x166   :  { %1472 = vmatpush3.bf16.msra.mxu0 %v1469_v5  ;;  %v641_v5 = vld [vmem:[#allocation11 + $0x68] sm:$0xff] }
 0x167   :  { %1474 = vmatprep.subr.bf16.mxu0 %v1473_v9  ;;  %v1537_v8 = vpack.c.bf16 %v644_v6, %v641_v5  ;;  %v1629_v5 = vpack.c.bf16 %v886_v62, %v885_v61  ;;  %v871_v6 = vld [vmem:[#allocation13 + $0xa0] sm:$0xff]  ;;  %v678_v61 = vlaneseq }
 0x169   :  { %v679_v62 = vshrl.u32 %v678_v61, 7 }
 0x16a   :  { %1476 = vmatpush3.bf16.msra.mxu0 %v1473_v9  ;;  %v640_v9 = vld [vmem:[#allocation11 + $0x60] sm:$0xff] }
 0x16b   :  { %1478 = vmatprep.subr.bf16.mxu0 %v1477_v12  ;;  %v1539_v13 = vpack.c.bf16 %v643_v10, %v640_v9  ;;  %v888_v9 = vld [vmem:[#allocation13 + $0x128] sm:$0xff]  ;;  %v1599_v10 = vpack.c.bf16 %v854_v4, %v853_v3 }
 0x16e   :  { %1480 = vmatpush3.bf16.msra.mxu0 %v1477_v12  ;;  %v650_v12 = vld [vmem:[#allocation11 + $0xb0] sm:$0xff] }
 0x16f   :  { %1482 = vmatprep.subr.bf16.mxu0 %v1481_v15  ;;  %v1541_v14 = vpack.c.bf16 %v650_v12, %v647_v11  ;;  %v855_v12 = vld [vmem:[#allocation13 + $0x20] sm:$0xff] }
 0x172   :  { %1484 = vmatpush3.bf16.msra.mxu0 %v1481_v15  ;;  %v646_v15 = vld [vmem:[#allocation11 + $0x90] sm:$0xff] }
 0x173   :  { %1486 = vmatprep.subr.bf16.mxu0 %v1485_v18  ;;  %v1543_v19 = vpack.c.bf16 %v649_v16, %v646_v15  ;;  %v873_v15 = vld [vmem:[#allocation13 + $0xb0] sm:$0xff]  ;;  %v874_v16 = vld [vmem:[#allocation13 + $0xb8] sm:$0xff] }
 0x176   :  { %1488 = vmatpush3.bf16.msra.mxu0 %v1485_v18  ;;  %v656_v18 = vld [vmem:[#allocation11 + $0xe0] sm:$0xff] }
 0x177   :  { %1490 = vmatprep.subr.bf16.mxu0 %v1489_v21  ;;  %v1545_v20 = vpack.c.bf16 %v656_v18, %v653_v17  ;;  %v889_v17 = vld [vmem:[#allocation13 + $0x130] sm:$0xff]  ;;  %v890_v18 = vld [vmem:[#allocation13 + $0x138] sm:$0xff] }
 0x17a   :  { %1492 = vmatpush3.bf16.msra.mxu0 %v1489_v21  ;;  %v652_v21 = vld [vmem:[#allocation11 + $0xc0] sm:$0xff] }
 0x17b   :  { %1494 = vmatprep.subr.bf16.mxu0 %v1493_v24  ;;  %v1547_v25 = vpack.c.bf16 %v655_v22, %v652_v21  ;;  %v857_v21 = vld [vmem:[#allocation13 + $0x30] sm:$0xff]  ;;  %v858_v22 = vld [vmem:[#allocation13 + $0x38] sm:$0xff] }
 0x17c   :  { %v1607_v28 = vpack.c.bf16 %v858_v22, %v857_v21 }
 0x17e   :  { %1496 = vmatpush3.bf16.msra.mxu0 %v1493_v24  ;;  %v662_v24 = vld [vmem:[#allocation11 + $0x110] sm:$0xff] }
 0x17f   :  { %1562 = vmatprep.subr.bf16.mxu0 %v1561_v35 }
 0x181   :  { %1322 = vmatmul.mubr.f32.vlgmr.msra.gmra.mrb[0].mxu0 %v239_v26  ;;  %v1549_v26 = vpack.c.bf16 %v662_v24, %v659_v23  ;;  %v1637_v23 = vpack.c.bf16 %v890_v18, %v889_v17  ;;  %v875_v24 = vld [vmem:[#allocation13 + $0xc0] sm:$0xff] }
 0x182   :  { %1564 = vmatpush3.bf16.msra.mxu0 %v1561_v35  ;;  %v1555_v35 = vpack.c.bf16 %v667_v34, %v664_v33  ;;  %v877_v33 = vld [vmem:[#allocation13 + $0xd0] sm:$0xff]  ;;  %v878_v34 = vld [vmem:[#allocation13 + $0xd8] sm:$0xff] }
 0x183   :  { %1566 = vmatprep.subr.bf16.mxu0 %v1565_v38 }
 0x186   :  { %1568 = vmatpush3.bf16.msra.mxu0 %v1565_v38  ;;  %v1557_v38 = vpack.c.bf16 %v674_v37, %v671_v36  ;;  %v894_v36 = vld [vmem:[#allocation13 + $0x158] sm:$0xff] }
 0x187   :  { %1570 = vmatprep.subr.bf16.mxu0 %v1569_v41 }
 0x18a   :  { %1572 = vmatpush3.bf16.msra.mxu0 %v1569_v41  ;;  %v1559_v41 = vpack.c.bf16 %v673_v40, %v670_v39  ;;  %v861_v39 = vld [vmem:[#allocation13 + $0x50] sm:$0xff]  ;;  %v862_v40 = vld [vmem:[#allocation13 + $0x58] sm:$0xff] }
 0x18b   :  { %1574 = vmatprep.subr.bf16.mxu0 %v1573_v44 }
 0x18e   :  { %1576 = vmatpush3.bf16.msra.mxu0 %v1573_v44  ;;  %v1589_v44 = vpack.c.bf16 %v675_v43, %v672_v42  ;;  %v879_v42 = vld [vmem:[#allocation13 + $0xe0] sm:$0xff]  ;;  %v880_v43 = vld [vmem:[#allocation13 + $0xe8] sm:$0xff] }
 0x18f   :  { %1578 = vmatprep.subr.bf16.mxu0 %v1577_v47 }
 0x192   :  { %1580 = vmatpush3.bf16.msra.mxu0 %v1577_v47  ;;  %v868_v47 = vld [vmem:[#allocation13 + $0x88] sm:$0xff] }
 0x193   :  { %1582 = vmatprep.subr.bf16.mxu0 %v1581_v50  ;;  %v1593_v48 = vpack.c.bf16 %v868_v47, %v867_v46  ;;  %v863_v46 = vld [vmem:[#allocation13 + $0x60] sm:$0xff]  ;;  %v864_v47 = vld [vmem:[#allocation13 + $0x68] sm:$0xff] }
 0x196   :  { %1584 = vmatpush3.bf16.msra.mxu0 %v1581_v50  ;;  %v884_v50 = vld [vmem:[#allocation13 + $0x108] sm:$0xff] }
 0x197   :  { %1586 = vmatprep.subr.bf16.mxu0 %v1585_v53  ;;  %v1625_v51 = vpack.c.bf16 %v884_v50, %v883_v49  ;;  %v1619_v49 = vpack.c.bf16 %v864_v47, %v863_v46  ;;  %v896_v50 = vld [vmem:[#allocation13 + $0x168] sm:$0xff] }
 0x19a   :  { %1588 = vmatpush3.bf16.msra.mxu0 %v1585_v53 }
 0x19b   :  { %1590 = vmatprep.subr.bf16.mxu0 %v1589_v44 }
 0x19e   :  { %1592 = vmatpush3.bf16.msra.mxu0 %v1589_v44  ;;  %v1615_v44 = vpack.c.bf16 %v862_v40, %v861_v39 }
 0x19f   :  { %1626 = vmatprep.subr.bf16.mxu0 %v1625_v51 }
 0x254   :  { %v1323_v55 = vpop.f32.mrb[0].mxu0 }
 0x255   :  { %v525_v56 = vadd.f32 %v1323_v55, %v1102_v54  ;;  %v508_v57 = vpop.f32.mrb[1].mxu0 }
 0x256   :  { %v524_v60 = vadd.f32 %v1102_v54, %v508_v57  ;;  %v852_v57 = vld [vmem:[#allocation13 + $0x8] sm:$0xff] }
 0x257   :  { %v527_v1 = vmax.f32 %v525_v56, 0.0  ;;  %v851_v56 = vld [vmem:[#allocation13] sm:$0xff] }
 0x258   :  { %v526_v63 = vmax.f32 %v524_v60, 0.0  ;;  %v870_v60 = vld [vmem:[#allocation13 + $0x98] sm:$0xff] }
 0x25a   :  { %1356 = vmatprep.mubr.f32.mxu1 %v526_v63 }
 0x25b   :  { %1357 = vmatmul.mubr.f32.vlgmr.msra.gmra.mrb[4].mxu1 %v527_v1 }
 0x25c   :  { %1532 = vmatpush1.bf16.msra.mxu1 %v1531_v0  ;;  %757 = vmatprep.mubr.f32.mxu1 %v1877_v45  ;;  %v1595_v0 = vpack.c.bf16 %v852_v57, %v851_v56  ;;  %v866_v56 = vld [vmem:[#allocation13 + $0x78] sm:$0xff]  ;;  %v897_v57 = vld [vmem:[#allocation13 + $0x170] sm:$0xff] }
 0x25d   :  { %1534 = vmatprep.subr.bf16.mxu1 %v1533_v2  ;;  %v1597_v2 = vpack.c.bf16 %v870_v60, %v869_v58 }
 0x260   :  { %1536 = vmatpush1.bf16.msra.mxu1 %v1535_v7  ;;  %v872_v7 = vld [vmem:[#allocation13 + $0xa8] sm:$0xff] }
 0x261   :  { %1538 = vmatprep.subr.bf16.mxu1 %v1537_v8  ;;  %v887_v8 = vld [vmem:[#allocation13 + $0x120] sm:$0xff]  ;;  %v1601_v11 = vpack.c.bf16 %v872_v7, %v871_v6 }
 0x264   :  { %1540 = vmatpush1.bf16.msra.mxu1 %v1539_v13  ;;  %v856_v13 = vld [vmem:[#allocation13 + $0x28] sm:$0xff] }
 0x265   :  { %1542 = vmatprep.subr.bf16.mxu1 %v1541_v14  ;;  %v1633_v14 = vpack.c.bf16 %v888_v9, %v887_v8 }
 0x268   :  { %1544 = vmatpush1.bf16.msra.mxu1 %v1543_v19  ;;  %v1603_v19 = vpack.c.bf16 %v856_v13, %v855_v12 }
 0x269   :  { %1546 = vmatprep.subr.bf16.mxu1 %v1545_v20  ;;  %v1605_v20 = vpack.c.bf16 %v874_v16, %v873_v15 }
 0x26c   :  { %1548 = vmatpush1.bf16.msra.mxu1 %v1547_v25  ;;  %v876_v25 = vld [vmem:[#allocation13 + $0xc8] sm:$0xff] }
 0x26d   :  { %1550 = vmatprep.subr.bf16.mxu1 %v1549_v26  ;;  %v891_v26 = vld [vmem:[#allocation13 + $0x140] sm:$0xff]  ;;  %v1609_v29 = vpack.c.bf16 %v876_v25, %v875_v24 }
 0x270   :  { %1552 = vmatpush1.bf16.msra.mxu1 %v1551_v31  ;;  %v860_v31 = vld [vmem:[#allocation13 + $0x48] sm:$0xff] }
 0x271   :  { %1554 = vmatprep.subr.bf16.mxu1 %v1553_v32  ;;  %v1641_v32 = vpack.c.bf16 %v892_v27, %v891_v26  ;;  %v1611_v37 = vpack.c.bf16 %v860_v31, %v859_v30  ;;  %v1104_v27 = vld [vmem:[%s2119_s14] ss:$0 sm:$0xff]  ;;  %s1878_s14 = smov [#allocation14]  }
 0x272   :  { %s1080_s26 = sshll.u32 %s1878_s14, 4  ;;  %s1081_s26 = int_to_ptr.vmem [resolvable:$true] %s1080_s26 }
 0x273   :  { %s1834_s20 = scalar_lea.vmem %s1081_s26, 256  ;;  %p1839_p1 = scmp.lt.s32.totalorder %s1081_s26, %s1081_s26 }
 0x274   :  { %1556 = vmatpush1.bf16.msra.mxu1 %v1555_v35  ;;  %v893_v35 = vld [vmem:[#allocation13 + $0x150] sm:$0xff]  ;;  %p1835_p0 = scmp.ne.s32.totalorder %s1081_s26, %s1834_s20  ;;  %p1840_p2 = scmp.lt.s32.totalorder %s1834_s20, %s1834_s20 }
 0x275   :  { %1558 = vmatprep.subr.bf16.mxu1 %v1557_v38  ;;  %v1613_v38 = vpack.c.bf16 %v878_v34, %v877_v33 }
 0x276   :  { %p1841_p3 = por %p1840_p2, %p1839_p1 }
 0x278   :  { %1560 = vmatpush1.bf16.msra.mxu1 %v1559_v41  ;;  %v1645_v41 = vpack.c.bf16 %v894_v36, %v893_v35  ;;  %p1842_p4 = pnand %p1841_p3, %p1835_p0 }
 0x279   :  { %1594 = vmatprep.subr.bf16.mxu1 %v1593_v48  ;;  %v895_v48 = vld [vmem:[#allocation13 + $0x160] sm:$0xff] }
 0x32e   :  { %v1358_v53 = vpop.f32.mrb[4].mxu1 }
 0x32f   :  { %v623_v54 = vadd.f32 %v1358_v53, %v1103_v52  ;;  %v617_v55 = vpop.f32.mrb[5].mxu1  ;;  %v882_v53 = vld [vmem:[#allocation13 + $0xf8] sm:$0xff] }
 0x330   :  { %v618_v59 = vadd.f32 %v1103_v52, %v617_v55  ;;  %v881_v52 = vld [vmem:[#allocation13 + $0xf0] sm:$0xff] }
 0x331   :  { %v627_v1 = vmax.f32 %v623_v54, 0.0  ;;  %v1621_v54 = vpack.c.bf16 %v882_v53, %v881_v52  ;;  %v865_v55 = vld [vmem:[#allocation13 + $0x70] sm:$0xff] }
 0x332   :  { %v626_v63 = vmax.f32 %v618_v59, 0.0  ;;  %v1623_v58 = vpack.c.bf16 %v866_v56, %v865_v55  ;;  %v898_v59 = vld [vmem:[#allocation13 + $0x178] sm:$0xff] }
 0x333   :  { %v1653_v60 = vpack.c.bf16 %v898_v59, %v897_v57 }
 0x334   :  { %758 = vmatmul.mubr.f32.vlgmr.msra.gmra.mrb[6].mxu1 %v626_v63  ;;  %1391 = vmatprep.mubr.f32.mxu0 %v626_v63  ;;  %v680_v63 = vsub.s32 0, %v679_v62 }
 0x335   :  { %1392 = vmatmul.mubr.f32.vlgmr.msra.gmra.mrb[2].mxu0 %v627_v1  ;;  %763 = vmatprep.mubr.f32.mxu1 %v1877_v45  ;;  %v1617_v45 = vpack.c.bf16 %v880_v43, %v879_v42  ;;  %v1057_v43 = vand.u32 127, %v678_v61 }
 0x336   :  { %1596 = vmatpush3.bf16.msra.mxu1 %v1595_v0  ;;  %1628 = vmatpush3.bf16.msra.mxu0 %v1625_v51  ;;  %v1649_v51 = vpack.c.bf16 %v896_v50, %v895_v48  ;;  %v676_v0 = vld [vmem:[%s2117_s12] sm:$0x7] }
 0x337   :  { %1598 = vmatprep.subr.bf16.mxu1 %v1597_v2  ;;  %1630 = vmatprep.subr.bf16.mxu0 %v1629_v5  ;;  %v688_v2 = vsub.s32 2, %v679_v62  ;;  %v681_v3 = vrot.slane %v676_v0, %v680_v63  ;;  %vm1058_vm3 = vcmp.eq.s32.totalorder %v1057_v43, 17 }
 0x338   :  { %764 = vmatmul.mubr.f32.gmra.mrb[8].mxu1 %v627_v1  ;;  %v684_v1 = vsub.s32 1, %v679_v62 }
 0x33a   :  { %1600 = vmatpush3.bf16.msra.mxu1 %v1599_v10  ;;  %1632 = vmatpush3.bf16.msra.mxu0 %v1629_v5  ;;  %v685_v4 = vrot.slane %v676_v0, %v684_v1  ;;  %v689_v5 = vrot.slane %v676_v0, %v688_v2 }
 0x33b   :  { %1602 = vmatprep.subr.bf16.mxu1 %v1601_v11  ;;  %1634 = vmatprep.subr.bf16.mxu0 %v1633_v14 }
 0x33e   :  { %1604 = vmatpush3.bf16.msra.mxu1 %v1603_v19  ;;  %1636 = vmatpush3.bf16.msra.mxu0 %v1633_v14 }
 0x33f   :  { %1606 = vmatprep.subr.bf16.mxu1 %v1605_v20  ;;  %1638 = vmatprep.subr.bf16.mxu0 %v1637_v23 }
 0x342   :  { %1608 = vmatpush3.bf16.msra.mxu1 %v1607_v28  ;;  %1640 = vmatpush3.bf16.msra.mxu0 %v1637_v23 }
 0x343   :  { %1610 = vmatprep.subr.bf16.mxu1 %v1609_v29  ;;  %1642 = vmatprep.subr.bf16.mxu0 %v1641_v32 }
 0x346   :  { %1612 = vmatpush3.bf16.msra.mxu1 %v1611_v37  ;;  %1644 = vmatpush3.bf16.msra.mxu0 %v1641_v32 }
 0x347   :  { %1614 = vmatprep.subr.bf16.mxu1 %v1613_v38  ;;  %1646 = vmatprep.subr.bf16.mxu0 %v1645_v41 }
 0x34a   :  { %1616 = vmatpush3.bf16.msra.mxu1 %v1615_v44  ;;  %1648 = vmatpush3.bf16.msra.mxu0 %v1645_v41 }
 0x34b   :  { %1618 = vmatprep.subr.bf16.mxu1 %v1617_v45  ;;  %1650 = vmatprep.subr.bf16.mxu0 %v1649_v51 }
 0x34e   :  { %1620 = vmatpush3.bf16.msra.mxu1 %v1619_v49  ;;  %1652 = vmatpush3.bf16.msra.mxu0 %v1649_v51 }
 0x34f   :  { %1622 = vmatprep.subr.bf16.mxu1 %v1621_v54  ;;  %1654 = vmatprep.subr.bf16.mxu0 %v1653_v60 }
 0x352   :  { %1624 = vmatpush3.bf16.msra.mxu1 %v1623_v58  ;;  %1656 = vmatpush3.bf16.msra.mxu0 %v1653_v60 }
 0x407   :  { %v759_v6 = vpop.f32.mrb[6].mxu1 }
 0x408   :  { %v760_v7 = vadd.f32 %v759_v6, %v681_v3  ;;  %v761_v8 = vpop.f32.mrb[7].mxu1  ;;  %v1393_v9 = vpop.f32.mrb[2].mxu0 }
 0x409   :  { %v762_v10 = vadd.f32 %v761_v8, %v685_v4  ;;  %v842_v11 = vadd.f32 %v1393_v9, %v689_v5  ;;  %v836_v12 = vpop.f32.mrb[3].mxu0 }
 0x40a   :  { %v837_v13 = vadd.f32 %v836_v12, %v689_v5  ;;  %v845_v16 = vmax.f32 %v760_v7, 0.0 }
 0x40b   :  { %v846_v14 = vmax.f32 %v762_v10, 0.0  ;;  %v765_v15 = vpop.f32.mrb[8].mxu1  ;;  %v850_v20 = vmax.f32 %v842_v11, 0.0 }
 0x40c   :  { %v847_v17 = vmax.f32 %v837_v13, 0.0  ;;  %v766_v18 = vadd.f32 %v765_v15, %v681_v3  ;;  %v767_v19 = vpop.f32.mrb[9].mxu1 }
 0x40d   :  { %v768_v21 = vadd.f32 %v767_v19, %v685_v4  ;;  %970 = vmatprep.mubr.f32.mxu1 %v846_v14 }
 0x40e   :  { %971 = vmatmul.mubr.f32.vlgmr.msra.gmra.mrb[10].mxu1 %v845_v16  ;;  %1426 = vmatprep.mubr.f32.mxu0 %v847_v17  ;;  %v848_v23 = vmax.f32 %v766_v18, 0.0 }
 0x40f   :  { %v849_v22 = vmax.f32 %v768_v21, 0.0  ;;  %1427 = vmatmul.mubr.f32.vlgmr.msra.gmra.mrb[4].mxu0 %v850_v20 }
 0x411   :  { %975 = vmatprep.mubr.f32.mxu1 %v849_v22 }
 0x412   :  { %976 = vmatmul.mubr.f32.gmra.mrb[12].mxu1 %v848_v23 }
 0x4e1   :  { %v1218_v24 = vpop.f32.mrb[10].mxu1 }
 0x4e2   :  { %v1219_v25 = vpop.f32.mrb[11].mxu1  ;;  %v1428_v26 = vpop.f32.mrb[4].mxu0 }
 0x4e3   :  { %v1220_v28 = vadd.f32 %v1219_v25, %v1218_v24  ;;  %v1047_v29 = vpop.f32.mrb[5].mxu0 }
 0x4e5   :  { %v973_v30 = vadd.f32 %v1220_v28, %v1104_v27  ;;  %v1221_v31 = vpop.f32.mrb[12].mxu1 }
 0x4e6   :  { %v1222_v32 = vpop.f32.mrb[13].mxu1 }
 0x4e7   :  { %v1048_v33 = vadd.f32 %v1047_v29, %v973_v30  ;;  %v1223_v34 = vadd.f32 %v1222_v32, %v1221_v31 }
 0x4e9   :  { %v1105_v35 = vmul.f32 -1.442695, %v1048_v33  ;;  %v978_v36 = vadd.f32 %v1223_v34, %v1104_v27 }
 0x4eb   :  { %1672 = vpow2.f32 %v1105_v35  ;;  %v1053_v37 = vadd.f32 %v1428_v26, %v978_v36 }
 0x4ed   :  { %v1106_v38 = vmul.f32 -1.442695, %v1053_v37 }
 0x4ef   :  { %1674 = vpow2.f32 %v1106_v38 }
 0x4f5   :  { %v1673_v39 = vpop.eup %1672 }
 0x4f6   :  { %v1065_v40 = vadd.f32 1.0, %v1673_v39 }
 0x4f8   :  { %1676 = vrcp.f32 %v1065_v40 }
 0x4f9   :  { %v1675_v41 = vpop.eup %1674 }
 0x4fa   :  { %v1066_v42 = vadd.f32 1.0, %v1675_v41 }
 0x4fc   :  { %1678 = vrcp.f32 %v1066_v42 }
 0x502   :  { %v1677_v44 = vpop.eup %1676 }
 0x503   :  { %v1071_v45 = vsel %vm1058_vm3, %v1677_v44, %v1048_v33 }
 0x504   :  { %1073 = vst [vmem:[#allocation14] sm:$0xff] %v1071_v45 }
 0x506   :  { %v1679_v46 = vpop.eup %1678 }
 0x507   :  { %v1072_v47 = vsel %vm1058_vm3, %v1679_v46, %v1053_v37 }
 0x508   :  { %1074 = vst [vmem:[#allocation14 + $0x8] sm:$0xff] %v1072_v47 }
 0x509   :  { %1845 = shalt.err (!%p1842_p4)
}
 0x50a   :  { %s1846_s25 = scalar_lea.hbm %s2120_s15, 256 }
 0x50b   :  { %p1847_p5 = scmp.ne.s32.totalorder %s2120_s15, %s1846_s25  ;;  %p1850_p6 = scmp.lt.u32.totalorder %s1846_s25, %s2120_s15 }
 0x50d   :  { %p1852_p7 = pnand %p1850_p6, %p1847_p5 }
 0x50f   :  { %1855 = shalt.err (!%p1852_p7)
}
 0x510   :  { %1086 = dma.vmem_to_hbm [thread:$0]  %s1081_s26, 256, %s2120_s15, [#allocation4], %s2123_s2, %s2123_s2, %s1870_s28  }
 0x511   :  { %1864 = dma.done.wait [#allocation4], 256  }
 0x512   :  { %1865 = vsyncadd [#allocation4], 4294967040 }
 0x513   :  { %1090 = vsyncpa [#allocation3], 1 }
 0x514   :  { %1091 = vsyncpa [#allocation6], 1 }
 0x515   :  { %1092 = vsyncpa [#allocation9], 1 }
 0x516   :  { %1093 = vsyncpa [#allocation12], 1 }
 0x517   :  { %1094 = vsyncpa [#allocation4], 1 }

</bundles_post_ra>
